<compile_context>
chip_gen: v5e
topology: v5e:2x2
jax: 0.10.0
libtpu: 0.0.40
codegen_flags: <defaults>
</compile_context>

<pallas_src>
import jax
import jax.numpy as jnp
from jax.experimental import pallas as pl
from jax.experimental.pallas import tpu as pltpu


def _hce_kernel(logits_ref, rg_ref, wt_ref, num_ref, den_ref):
    """One batch tile: softmax (deferred norm) -> per-row dot with R[target] -> log -> partials."""
    x = logits_ref[...].astype(jnp.float32)               # (tm, C)
    rg = rg_ref[...].astype(jnp.float32)                   # (tm, C) rows of R gathered by target
    wt = wt_ref[...]                                        # (tm, 1) f32, 0 on padded rows

    # Numerically-stable softmax with deferred normalization:
    #   probs = e / s ;  hier[i, t_i] = (e_i . R[t_i]) / s_i
    #   log(hier[i, t_i] + eps) = log(e_i . R[t_i] + eps * s_i) - log(s_i)
    m = jnp.max(x, axis=-1, keepdims=True)
    e = jnp.exp(x - m)
    s = jnp.sum(e, axis=-1, keepdims=True)                  # (tm, 1)
    picked = jnp.sum(e * rg, axis=-1, keepdims=True)        # (tm, 1)
    logp = jnp.log(picked + jnp.float32(1e-6) * s) - jnp.log(s)

    num = -jnp.sum(wt * logp)                                # weighted NLL numerator (partial)
    den = jnp.sum(wt)                                        # weight sum (partial)

    # Lane-dense (8,128) partial outputs -> unmasked stores; reduced in the wrapper.
    num_ref[...] = jnp.full(num_ref.shape, num, jnp.float32)
    den_ref[...] = jnp.full(den_ref.shape, den, jnp.float32)


def make_hierarchical_ce_loss(reachability_matrix, cross_entropy_weight, *,
                              r_dtype=jnp.bfloat16, block_rows=None,
                              target_tile_bytes=4 << 20):
    """Builds the loss fn once (precomputes parameters, like nn.Module.__init__).

    r_dtype controls the dtype of the gathered reachability rows that are streamed through
    the kernel.  For a 0/1 reachability matrix the bf16 default is exactly lossless (values
    0.0 / 1.0 are representable), and it halves that stream's HBM traffic; pass jnp.float32
    for arbitrary-valued reachability matrices.
    """
    rmat = jnp.asarray(reachability_matrix, jnp.float32)
    C = rmat.shape[0]
    r_gather_src = rmat.astype(r_dtype)                      # rows gathered by target below
    w = jnp.asarray(cross_entropy_weight, jnp.float32).reshape(C)

    def loss_fn(logits, targets):
        B, Cx = logits.shape
        assert Cx == C, (Cx, C)

        il = jnp.dtype(logits.dtype).itemsize
        ir = jnp.dtype(r_dtype).itemsize

        if block_rows is None:
            # Target ~target_tile_bytes of streamed inputs + f32 temporaries per tile:
            # large enough to amortize the ~0.35 us/grid-step overhead, small enough to
            # stay well inside v7x's 64 MiB VMEM at large class counts.
            per_row = C * (2 * (il + ir) + 3 * 4) + 16
            tm = max(8, min(2048, (target_tile_bytes // per_row) // 8 * 8))
        else:
            tm = max(8, (block_rows // 8) * 8)
        tm = min(tm, ((B + 7) // 8) * 8)

        n_tiles = pl.cdiv(B, tm)
        b_pad = n_tiles * tm

        tgt = jnp.asarray(targets, jnp.int32)
        # Gather only what the loss uses: the target's reachability row and class weight.
        rg = jnp.take(r_gather_src, tgt, axis=0)             # (B, C)
        wt = jnp.take(w, tgt, axis=0).reshape(B, 1)          # (B, 1)

        logits_p = logits                                     # no host-side dtype cast
        if b_pad != B:
            pad = b_pad - B
            logits_p = jnp.pad(logits_p, ((0, pad), (0, 0)))
            rg = jnp.pad(rg, ((0, pad), (0, 0)))
            wt = jnp.pad(wt, ((0, pad), (0, 0)))              # wt == 0 -> padded rows are no-ops

        # VMEM budget: double-buffered streamed tiles + f32 in-kernel temporaries + outputs,
        # clamped to 90% of the physical per-core VMEM (64 MiB on v7x).
        tile_stream = tm * C * (il + ir) + tm * 4
        vmem_needed = 2 * tile_stream + 4 * tm * C * 4 + 4 * 2 * 8 * 128 * 4
        try:
            cap = int(pltpu.get_tpu_info().vmem_capacity_bytes)
        except Exception:
            cap = 64 << 20                                     # v7x lower bound
        vmem_limit = int(min((cap * 9) // 10, max(vmem_needed, 16 << 20)))

        num_parts, den_parts = pl.pallas_call(
            _hce_kernel,
            out_shape=(jax.ShapeDtypeStruct((n_tiles, 8, 128), jnp.float32),
                       jax.ShapeDtypeStruct((n_tiles, 8, 128), jnp.float32)),
            grid=(n_tiles,),
            in_specs=[
                pl.BlockSpec((tm, C), lambda i: (i, 0)),      # logits tile (pipelined)
                pl.BlockSpec((tm, C), lambda i: (i, 0)),      # gathered R rows tile (pipelined)
                pl.BlockSpec((tm, 1), lambda i: (i, 0)),      # gathered class weights tile
            ],
            out_specs=(
                pl.BlockSpec((1, 8, 128), lambda i: (i, 0, 0)),   # per-tile numerator partial
                pl.BlockSpec((1, 8, 128), lambda i: (i, 0, 0)),   # per-tile denominator partial
            ),
            compiler_params=pltpu.CompilerParams(
                # No carried state -> batch axis is truly parallel (both TCs on v7x).
                dimension_semantics=("parallel",),
                vmem_limit_bytes=vmem_limit,
            ),
        )(logits_p, rg, wt)

        num = jnp.sum(num_parts[:, 0, 0])
        den = jnp.sum(den_parts[:, 0, 0])
        return num / den

    return loss_fn


def hierarchical_ce_loss(logits, targets, reachability_matrix, cross_entropy_weight):
    """One-shot convenience wrapper (prefer make_hierarchical_ce_loss for repeated calls)."""
    return make_hierarchical_ce_loss(reachability_matrix, cross_entropy_weight)(logits, targets)


def _reference(logits, targets, R, w):
    probs = jax.nn.softmax(logits.astype(jnp.float32), axis=-1)
    hier = probs @ jnp.asarray(R, jnp.float32).T
    logp = jnp.log(hier + 1e-6)
    w = jnp.asarray(w, jnp.float32)
    wt = w[targets]
    picked = logp[jnp.arange(logits.shape[0]), targets]
    return jnp.sum(-wt * picked) / jnp.sum(wt)


if __name__ == "__main__":
    key = jax.random.PRNGKey(0)

    # deterministic "parameters" (same as the module __init__ would hold)
    reachability_matrix = jnp.array([[1, 1, 1],
                                     [0, 1, 0],
                                     [0, 0, 1]], dtype=jnp.float32)
    cross_entropy_weight = jnp.array([1.0, 2.0, 0.5], dtype=jnp.float32)

    loss_fn = make_hierarchical_ce_loss(reachability_matrix, cross_entropy_weight)

    k1, k2, k3, k4 = jax.random.split(key, 4)

    # Case 1: small batch, single tile (matches the module's 3-class spec)
    B, C = 8, 3
    logits = jax.random.normal(k1, (B, C), dtype=jnp.float32)
    targets = jax.random.randint(k2, (B,), 0, C, dtype=jnp.int32)
    loss = jax.block_until_ready(loss_fn(logits, targets))
    ref = _reference(logits, targets, reachability_matrix, cross_entropy_weight)
    assert jnp.allclose(loss, ref, atol=1e-5, rtol=1e-5), (loss, ref)

    # Case 2: multi-tile, ragged batch (exercises grid, padding, partial-sum reduction)
    loss_fn_tiled = make_hierarchical_ce_loss(reachability_matrix, cross_entropy_weight,
                                              block_rows=64)
    B2 = 300
    logits2 = jax.random.normal(k3, (B2, C), dtype=jnp.float32)
    targets2 = jax.random.randint(k4, (B2,), 0, C, dtype=jnp.int32)
    loss2 = jax.block_until_ready(loss_fn_tiled(logits2, targets2))
    ref2 = _reference(logits2, targets2, reachability_matrix, cross_entropy_weight)
    assert jnp.allclose(loss2, ref2, atol=1e-5, rtol=1e-5), (loss2, ref2)

    print("KERNEL_OK")
</pallas_src>

<mosaic_0001>
module attributes {stable_mosaic.version = 11 : i64} {
  func.func @_hce_kernel(%arg0: i32, %arg1: memref<8x3xf32, #tpu.memory_space<vmem>>, %arg2: memref<8x3xbf16, #tpu.memory_space<vmem>>, %arg3: memref<8x1xf32, #tpu.memory_space<vmem>>, %arg4: memref<1x8x128xf32, #tpu.memory_space<vmem>>, %arg5: memref<1x8x128xf32, #tpu.memory_space<vmem>>) attributes {dimension_semantics = [#tpu.dimension_semantics<parallel>], iteration_bounds = array<i64: 1>, scalar_prefetch = 0 : i64, scratch_operands = 0 : i64, tpu.core_type = #tpu.core_type<tc>, window_params = [{transform_indices = @transform_0, window_bounds = array<i64: 8, 3>}, {transform_indices = @transform_1, window_bounds = array<i64: 8, 3>}, {transform_indices = @transform_2, window_bounds = array<i64: 8, 1>}, {transform_indices = @transform_3, window_bounds = array<i64: 1, 8, 128>}, {transform_indices = @transform_4, window_bounds = array<i64: 1, 8, 128>}]} {
    %c0 = arith.constant 0 : index
    %c0_0 = arith.constant 0 : index
    %0 = vector.load %arg1[%c0, %c0_0] : memref<8x3xf32, #tpu.memory_space<vmem>>, vector<8x3xf32>
    %c0_1 = arith.constant 0 : index
    %c0_2 = arith.constant 0 : index
    %1 = vector.load %arg2[%c0_1, %c0_2] : memref<8x3xbf16, #tpu.memory_space<vmem>>, vector<8x3xbf16>
    %2 = arith.extf %1 : vector<8x3xbf16> to vector<8x3xf32>
    %c0_3 = arith.constant 0 : index
    %c0_4 = arith.constant 0 : index
    %3 = vector.load %arg3[%c0_3, %c0_4] : memref<8x1xf32, #tpu.memory_space<vmem>>, vector<8x1xf32>
    %cst = arith.constant dense<0xFF800000> : vector<8xf32>
    %4 = vector.multi_reduction <maximumf>, %0, %cst [1] : vector<8x3xf32> to vector<8xf32>
    %5 = vector.shape_cast %4 : vector<8xf32> to vector<8x1xf32>
    %6 = vector.broadcast %5 : vector<8x1xf32> to vector<8x3xf32>
    %7 = arith.subf %0, %6 : vector<8x3xf32>
    %8 = math.exp %7 : vector<8x3xf32>
    %cst_5 = arith.constant dense<0.000000e+00> : vector<8xf32>
    %9 = vector.multi_reduction <add>, %8, %cst_5 [1] : vector<8x3xf32> to vector<8xf32>
    %10 = vector.shape_cast %9 : vector<8xf32> to vector<8x1xf32>
    %11 = arith.mulf %8, %2 : vector<8x3xf32>
    %cst_6 = arith.constant dense<0.000000e+00> : vector<8xf32>
    %12 = vector.multi_reduction <add>, %11, %cst_6 [1] : vector<8x3xf32> to vector<8xf32>
    %13 = vector.shape_cast %12 : vector<8xf32> to vector<8x1xf32>
    %cst_7 = arith.constant 9.99999997E-7 : f32
    %14 = vector.broadcast %cst_7 : f32 to vector<8x1xf32>
    %15 = arith.mulf %14, %10 : vector<8x1xf32>
    %16 = arith.addf %13, %15 : vector<8x1xf32>
    %17 = math.log %16 : vector<8x1xf32>
    %18 = math.log %10 : vector<8x1xf32>
    %19 = arith.subf %17, %18 : vector<8x1xf32>
    %20 = arith.mulf %3, %19 : vector<8x1xf32>
    %21 = vector.shape_cast %20 : vector<8x1xf32> to vector<1x8x1xf32>
    %cst_8 = arith.constant dense<0.000000e+00> : vector<1xf32>
    %22 = vector.multi_reduction <add>, %21, %cst_8 [1, 2] : vector<1x8x1xf32> to vector<1xf32>
    %23 = vector.shape_cast %22 : vector<1xf32> to vector<1x1x1xf32>
    %24 = vector.extract %23[0, 0, 0] : f32 from vector<1x1x1xf32>
    %cst_9 = arith.constant 0.000000e+00 : f32
    %25 = arith.subf %cst_9, %24 : f32
    %26 = vector.shape_cast %3 : vector<8x1xf32> to vector<1x8x1xf32>
    %cst_10 = arith.constant dense<0.000000e+00> : vector<1xf32>
    %27 = vector.multi_reduction <add>, %26, %cst_10 [1, 2] : vector<1x8x1xf32> to vector<1xf32>
    %28 = vector.shape_cast %27 : vector<1xf32> to vector<1x1x1xf32>
    %29 = vector.extract %28[0, 0, 0] : f32 from vector<1x1x1xf32>
    %30 = vector.broadcast %25 : f32 to vector<1x8x128xf32>
    %c0_11 = arith.constant 0 : index
    %c0_12 = arith.constant 0 : index
    %c0_13 = arith.constant 0 : index
    %31 = vector.load %arg4[%c0_11, %c0_12, %c0_13] : memref<1x8x128xf32, #tpu.memory_space<vmem>>, vector<1x8x128xf32>
    tpu.vector_store %arg4[%c0_11, %c0_12, %c0_13], %30 {strides = array<i32>} : memref<1x8x128xf32, #tpu.memory_space<vmem>>, vector<1x8x128xf32>,
    %32 = vector.broadcast %29 : f32 to vector<1x8x128xf32>
    %c0_14 = arith.constant 0 : index
    %c0_15 = arith.constant 0 : index
    %c0_16 = arith.constant 0 : index
    %33 = vector.load %arg5[%c0_14, %c0_15, %c0_16] : memref<1x8x128xf32, #tpu.memory_space<vmem>>, vector<1x8x128xf32>
    tpu.vector_store %arg5[%c0_14, %c0_15, %c0_16], %32 {strides = array<i32>} : memref<1x8x128xf32, #tpu.memory_space<vmem>>, vector<1x8x128xf32>,
    return
  }
  func.func @transform_0(%arg0: i32) -> (i32, i32) {
    %c0_i32 = arith.constant 0 : i32
    %c0_i32_0 = arith.constant 0 : i32
    return %arg0, %c0_i32 : i32, i32
  }
  func.func @transform_1(%arg0: i32) -> (i32, i32) {
    %c0_i32 = arith.constant 0 : i32
    %c0_i32_0 = arith.constant 0 : i32
    return %arg0, %c0_i32 : i32, i32
  }
  func.func @transform_2(%arg0: i32) -> (i32, i32) {
    %c0_i32 = arith.constant 0 : i32
    %c0_i32_0 = arith.constant 0 : i32
    return %arg0, %c0_i32 : i32, i32
  }
  func.func @transform_3(%arg0: i32) -> (i32, i32, i32) {
    %c0_i32 = arith.constant 0 : i32
    %c0_i32_0 = arith.constant 0 : i32
    %c0_i32_1 = arith.constant 0 : i32
    return %arg0, %c0_i32, %c0_i32_0 : i32, i32, i32
  }
  func.func @transform_4(%arg0: i32) -> (i32, i32, i32) {
    %c0_i32 = arith.constant 0 : i32
    %c0_i32_0 = arith.constant 0 : i32
    %c0_i32_1 = arith.constant 0 : i32
    return %arg0, %c0_i32, %c0_i32_0 : i32, i32, i32
  }
}

</mosaic_0001>

<bundles_post_ra>
// kernel: tpu_custom_call.1
= control target key start
LH: loop header
LB: loop body
LE: loop exit
PB: predicated region body
PF: predicated region fallthrough
CT: control target
= control target key end

     0   :  { %10 = vsyncpa [#allocation3], 0  ;;  %vm22_vm0 = vcmask 23552   ;;  %s208_s0 = inlined_call_operand.vmem [shape: f32[8,3], index: 0, kind: input, shape index: {}]   ;;  %s209_s1 = inlined_call_operand.vmem [shape: bf16[8,3], index: 1, kind: input, shape index: {}]   ;;  %s210_s2 = inlined_call_operand.vmem [shape: f32[8,1], index: 2, kind: input, shape index: {}]   ;;  %s211_s3 = inlined_call_operand.hbm [shape: f32[1,8,128], index: 3, kind: output, shape index: {0}]   ;;  %s212_s4 = inlined_call_operand.hbm [shape: f32[1,8,128], index: 4, kind: output, shape index: {1}]  }
   0x1   :  { %v18_v0 = vld [vmem:[%s208_s0] sm:$0xff] }
   0x2   :  { %11 = vsyncpa [#allocation5], 0  ;;  %v23_v1 = vsel %vm22_vm0, %v18_v0, -inf  ;;  %v19_v5 = vld [vmem:[%s209_s1] sm:$0xf]  ;;  %vm44_vm1 = vcmask 7168  }
   0x3   :  { %24 = vmax.xlane.f32.xlu0 %v23_v1  ;;  %v20_v6 = vunpack.c.l.bf16 %v19_v5  ;;  %v21_v11 = vld [vmem:[%s210_s2] sm:$0xff]  ;;  %s166_s1 = smov [#allocation4]   ;;  %s88_s22 = sshll.u32 %s212_s4, 4  ;;  %s89_s22 = int_to_ptr.hbm [resolvable:$true] %s88_s22 }
   0x4   :  { %v56_v12 = vsel %vm44_vm1, %v21_v11, 0.0  ;;  %s86_s2 = sshll.u32 %s166_s1, 4  ;;  %s167_s23 = smov [#allocation2]   ;;  %s87_s2 = int_to_ptr.vmem [resolvable:$true] %s86_s2 }
   0x5   :  { %57 = vadd.xlane.f32.xlu2 %v56_v12  ;;  %s75_s24 = sshll.u32 %s167_s23, 4  ;;  %s77_s27 = sshll.u32 %s211_s3, 4  ;;  %s76_s24 = int_to_ptr.vmem [resolvable:$true] %s75_s24  ;;  %s78_s27 = int_to_ptr.hbm [resolvable:$true] %s77_s27 }
  0x76   :  { %v25_v2 = vpop.xlane.xlu0 %24 }
  0x77   :  { %v26_v3 = vsub.f32 %v18_v0, %v25_v2 }
  0x78   :  { %v58_v24 = vpop.xlane.xlu2 %57 }
  0x79   :  { %v27_v4 = vmul.f32 1.442695, %v26_v3  ;;  %v59_v25 = vrot.slane %v58_v24, 4 }
  0x7b   :  { %108 = vpow2.f32 %v27_v4  ;;  %v60_v26 = vadd.f32 %v59_v25, %v58_v24 }
  0x7d   :  { %v61_v27 = vrot.slane %v60_v26, 2 }
  0x7f   :  { %v62_v31 = vadd.f32 %v61_v27, %v60_v26 }
  0x81   :  { %v109_v7 = vpop.eup %108  ;;  %v63_v34 = vrot.slane %v62_v31, 1 }
  0x82   :  { %v29_v8 = vsel %vm22_vm0, %v109_v7, 0.0  ;;  %v32_v9 = vmul.f32 %v109_v7, %v20_v6 }
  0x83   :  { %30 = vadd.xlane.f32.xlu0 %v29_v8  ;;  %v64_v37 = vadd.f32 %v63_v34, %v62_v31 }
  0x84   :  { %v33_v10 = vsel %vm22_vm0, %v32_v9, 0.0 }
  0x85   :  { %34 = vadd.xlane.f32.xlu1 %v33_v10 }
  0xf6   :  { %v31_v13 = vpop.xlane.xlu0 %30 }
  0xf7   :  { %v36_v14 = vmul.f32 1e-06, %v31_v13  ;;  %110 = vlog2.f32 %v31_v13 }
  0xf8   :  { %v35_v15 = vpop.xlane.xlu1 %34 }
  0xf9   :  { %v37_v16 = vadd.f32 %v36_v14, %v35_v15 }
  0xfb   :  { %112 = vlog2.f32 %v37_v16 }
  0xfd   :  { %v111_v17 = vpop.eup %110 }
  0xfe   :  { %v41_v19 = vmul.f32 0.6931472, %v111_v17 }
 0x101   :  { %v113_v18 = vpop.eup %112 }
 0x102   :  { %v39_v20 = vmul.f32 0.6931472, %v113_v18 }
 0x104   :  { %v42_v21 = vsub.f32 %v39_v20, %v41_v19 }
 0x106   :  { %v43_v22 = vmul.f32 %v42_v21, %v21_v11 }
 0x108   :  { %v45_v23 = vsel %vm44_vm1, %v43_v22, 0.0 }
 0x109   :  { %46 = vadd.xlane.f32.xlu1 %v45_v23 }
 0x17c   :  { %v47_v28 = vpop.xlane.xlu1 %46 }
 0x17d   :  { %v48_v29 = vrot.slane %v47_v28, 4 }
 0x17f   :  { %v49_v30 = vadd.f32 %v48_v29, %v47_v28 }
 0x181   :  { %v50_v32 = vrot.slane %v49_v30, 2 }
 0x183   :  { %v51_v33 = vadd.f32 %v50_v32, %v49_v30 }
 0x185   :  { %v52_v35 = vrot.slane %v51_v33, 1 }
 0x187   :  { %v53_v36 = vadd.f32 %v52_v35, %v51_v33 }
 0x189   :  { %102 = vpush %v53_v36 }
 0x18a   :  { %104 = vpush %v64_v37 }
 0x1ba   :  { %s103_s28 = spop %102 }
 0x1bb   :  { %s55_s29 = ssub.f32 0.0, %s103_s28  ;;  %s105_s30 = spop %104 }
 0x1bc   :  { %v68_v38 = vstv %s105_s30 }
 0x1bd   :  { %v66_v39 = vstv %s55_s29  ;;  %69 = vst [vmem:[#allocation4] sm:$0xff] %v68_v38 }
 0x1be   :  { %67 = vst [vmem:[#allocation2] sm:$0xff] %v66_v39  ;;  %91 = dma.vmem_to_hbm [thread:$0]  %s87_s2, 128, %s89_s22, [#allocation5]  }
 0x1bf   :  { %80 = dma.vmem_to_hbm [thread:$0]  %s76_s24, 128, %s78_s27, [#allocation3]  }
 0x1c0   :  { %162 = dma.done.wait [#allocation3], 128  }
 0x1c1   :  { %163 = vsyncadd [#allocation3], 4294967168 }
 0x1c2   :  { %164 = dma.done.wait [#allocation5], 128  }
 0x1c3   :  { %165 = vsyncadd [#allocation5], 4294967168 }
 0x1c4   :  { %100 = vsyncpa [#allocation3], 1 }
 0x1c5   :  { %101 = vsyncpa [#allocation5], 1 }

</bundles_post_ra>
